<compile_context>
chip_gen: v5e
topology: v5e:2x2
jax: 0.10.0
libtpu: 0.0.40
codegen_flags: <defaults>
</compile_context>

<pallas_src>
import jax
import jax.numpy as jnp
from jax.experimental import pallas as pl
from jax.experimental.pallas import tpu as pltpu

_LANES = 128

# Packed-parameter layout (33 f32 scalars, resident in SMEM):
#   [0:4)   w1[0, j]                  (Linear(1,4) weight, stored (in, out))
#   [4:8)   b1[j]
#   [8:24)  w2[j, k] at 8 + j*4 + k   (Linear(4,4) weight, stored (in, out))
#   [24:28) b2[k]
#   [28:32) w3[k, 0]                  (Linear(4,1) weight, stored (in, out))
#   [32]    b3


def _mlp_kernel(p_ref, x_ref, o_ref):
    x = x_ref[...]                                      # (tile_rows, 128) f32

    # layer 1: 1 -> 4   (4 scalar-splat FMAs on the VPU)
    h1 = [x * p_ref[j] + p_ref[4 + j] for j in range(4)]

    # layer 2: 4 -> 4   (16 FMAs)
    h2 = []
    for k in range(4):
        acc = h1[0] * p_ref[8 + k] + p_ref[24 + k]
        for j in range(1, 4):
            acc = acc + h1[j] * p_ref[8 + 4 * j + k]
        h2.append(acc)

    # layer 3: 4 -> 1, then ReLU   (4 FMAs)
    y = h2[0] * p_ref[28] + p_ref[32]
    for k in range(1, 4):
        y = y + h2[k] * p_ref[28 + k]

    o_ref[...] = jnp.maximum(y, 0.0)


def _round_up(n, m):
    return ((n + m - 1) // m) * m


def _pack_params(params):
    return jnp.concatenate([
        params["w1"].reshape(-1),      # (4,)
        params["b1"].reshape(-1),      # (4,)
        params["w2"].reshape(-1),      # (16,) row-major (in, out) -> j*4 + k
        params["b2"].reshape(-1),      # (4,)
        params["w3"].reshape(-1),      # (4,)
        params["b3"].reshape(-1),      # (1,)
    ]).astype(jnp.float32)             # (33,)


def feedforward_nn(x, params, tile_rows=512):
    """x: (B, 1) or (B,) float32. Returns (B, 1) float32."""
    B = x.shape[0]
    packed = _pack_params(params)

    # Lane-dense layout: batch goes on the lane axis; pad B so the slab tiles
    # evenly into (tile_rows, 128) blocks (padded lanes are sliced off below).
    rows_min = -(-B // _LANES)                      # ceil(B / 128)
    if rows_min <= tile_rows:
        tr = _round_up(rows_min, 8)                 # single tile, sublane aligned
        rows = tr
    else:
        tr = tile_rows                              # 512*128*4B = 256 KiB / buffer
        rows = _round_up(rows_min, tr)
    b_pad = rows * _LANES

    x_flat = x.reshape(-1).astype(jnp.float32)
    x2d = jnp.pad(x_flat, (0, b_pad - B)).reshape(rows, _LANES)

    out2d = pl.pallas_call(
        _mlp_kernel,
        out_shape=jax.ShapeDtypeStruct((rows, _LANES), jnp.float32),
        grid=(rows // tr,),
        in_specs=[
            pl.BlockSpec(memory_space=pltpu.MemorySpace.SMEM),   # packed weights
            pl.BlockSpec((tr, _LANES), lambda i: (i, 0)),        # x row tile
        ],
        out_specs=pl.BlockSpec((tr, _LANES), lambda i: (i, 0)),
        compiler_params=pltpu.CompilerParams(
            dimension_semantics=("parallel",)),                  # v7x: 2 TCs
    )(packed, x2d)

    return out2d.reshape(-1)[:B].reshape(B, 1)


def init_params(key):
    """Deterministic init matching PyTorch Linear shapes.

    PyTorch stores Linear weight as (out, in); we store the transpose (in, out)
    so the math is x @ W + b. Biases are (1, out).
    """
    k1, k2, k3, k4, k5, k6 = jax.random.split(key, 6)

    def uni(k, shape, fan_in):
        bound = 1.0 / jnp.sqrt(float(fan_in))
        return jax.random.uniform(k, shape, jnp.float32, -bound, bound)

    return {
        "w1": uni(k1, (1, 4), 1),   # linear1: Linear(1, 4)
        "b1": uni(k2, (1, 4), 1),
        "w2": uni(k3, (4, 4), 4),   # hidden:  Linear(4, 4)
        "b2": uni(k4, (1, 4), 4),
        "w3": uni(k5, (4, 1), 4),   # linear2: Linear(4, 1)
        "b3": uni(k6, (1, 1), 4),
    }


def reference_forward(x, params):
    """Pure-JAX reference of the PyTorch forward pass."""
    h = x @ params["w1"] + params["b1"]
    h = h @ params["w2"] + params["b2"]
    y = h @ params["w3"] + params["b3"]
    return jnp.maximum(y, 0.0)


if __name__ == "__main__":
    key = jax.random.PRNGKey(0)
    kp, kx1, kx2 = jax.random.split(key, 3)
    params = init_params(kp)

    # Small check (single tile path), batch=8, in_features=1.
    x_small = jax.random.normal(kx1, (8, 1), jnp.float32)
    out_small = jax.block_until_ready(feedforward_nn(x_small, params))
    ref_small = reference_forward(x_small, params)
    assert out_small.shape == (8, 1)
    assert jnp.allclose(out_small, ref_small, atol=1e-5, rtol=1e-5)

    # Multi-tile check: non-multiple-of-128 batch, forced small tile so the
    # grid/pipelining + padding path is exercised (5000 -> 5 tiles of (8,128)).
    x_big = jax.random.normal(kx2, (5000, 1), jnp.float32)
    out_big = jax.block_until_ready(feedforward_nn(x_big, params, tile_rows=8))
    ref_big = reference_forward(x_big, params)
    assert out_big.shape == (5000, 1)
    assert jnp.allclose(out_big, ref_big, atol=1e-5, rtol=1e-5)

    print("KERNEL_OK")
</pallas_src>

<mosaic_0001>
module attributes {stable_mosaic.version = 11 : i64} {
  func.func @_mlp_kernel(%arg0: i32, %arg1: memref<33xf32, #tpu.memory_space<smem>>, %arg2: memref<8x128xf32, #tpu.memory_space<vmem>>, %arg3: memref<8x128xf32, #tpu.memory_space<vmem>>) attributes {dimension_semantics = [#tpu.dimension_semantics<parallel>], iteration_bounds = array<i64: 1>, scalar_prefetch = 0 : i64, scratch_operands = 0 : i64, tpu.core_type = #tpu.core_type<tc>, window_params = [{transform_indices = @transform_0, window_bounds = array<i64: 33>}, {transform_indices = @transform_1, window_bounds = array<i64: 8, 128>}, {transform_indices = @transform_2, window_bounds = array<i64: 8, 128>}]} {
    %c0 = arith.constant 0 : index
    %c0_0 = arith.constant 0 : index
    %0 = vector.load %arg2[%c0, %c0_0] : memref<8x128xf32, #tpu.memory_space<vmem>>, vector<8x128xf32>
    %c0_1 = arith.constant 0 : index
    %1 = memref.load %arg1[%c0_1] : memref<33xf32, #tpu.memory_space<smem>>
    %2 = vector.broadcast %1 : f32 to vector<8x128xf32>
    %3 = arith.mulf %0, %2 : vector<8x128xf32>
    %c4 = arith.constant 4 : index
    %4 = memref.load %arg1[%c4] : memref<33xf32, #tpu.memory_space<smem>>
    %5 = vector.broadcast %4 : f32 to vector<8x128xf32>
    %6 = arith.addf %3, %5 : vector<8x128xf32>
    %c1 = arith.constant 1 : index
    %7 = memref.load %arg1[%c1] : memref<33xf32, #tpu.memory_space<smem>>
    %8 = vector.broadcast %7 : f32 to vector<8x128xf32>
    %9 = arith.mulf %0, %8 : vector<8x128xf32>
    %c5 = arith.constant 5 : index
    %10 = memref.load %arg1[%c5] : memref<33xf32, #tpu.memory_space<smem>>
    %11 = vector.broadcast %10 : f32 to vector<8x128xf32>
    %12 = arith.addf %9, %11 : vector<8x128xf32>
    %c2 = arith.constant 2 : index
    %13 = memref.load %arg1[%c2] : memref<33xf32, #tpu.memory_space<smem>>
    %14 = vector.broadcast %13 : f32 to vector<8x128xf32>
    %15 = arith.mulf %0, %14 : vector<8x128xf32>
    %c6 = arith.constant 6 : index
    %16 = memref.load %arg1[%c6] : memref<33xf32, #tpu.memory_space<smem>>
    %17 = vector.broadcast %16 : f32 to vector<8x128xf32>
    %18 = arith.addf %15, %17 : vector<8x128xf32>
    %c3 = arith.constant 3 : index
    %19 = memref.load %arg1[%c3] : memref<33xf32, #tpu.memory_space<smem>>
    %20 = vector.broadcast %19 : f32 to vector<8x128xf32>
    %21 = arith.mulf %0, %20 : vector<8x128xf32>
    %c7 = arith.constant 7 : index
    %22 = memref.load %arg1[%c7] : memref<33xf32, #tpu.memory_space<smem>>
    %23 = vector.broadcast %22 : f32 to vector<8x128xf32>
    %24 = arith.addf %21, %23 : vector<8x128xf32>
    %c8 = arith.constant 8 : index
    %25 = memref.load %arg1[%c8] : memref<33xf32, #tpu.memory_space<smem>>
    %26 = vector.broadcast %25 : f32 to vector<8x128xf32>
    %27 = arith.mulf %6, %26 : vector<8x128xf32>
    %c24 = arith.constant 24 : index
    %28 = memref.load %arg1[%c24] : memref<33xf32, #tpu.memory_space<smem>>
    %29 = vector.broadcast %28 : f32 to vector<8x128xf32>
    %30 = arith.addf %27, %29 : vector<8x128xf32>
    %c12 = arith.constant 12 : index
    %31 = memref.load %arg1[%c12] : memref<33xf32, #tpu.memory_space<smem>>
    %32 = vector.broadcast %31 : f32 to vector<8x128xf32>
    %33 = arith.mulf %12, %32 : vector<8x128xf32>
    %34 = arith.addf %30, %33 : vector<8x128xf32>
    %c16 = arith.constant 16 : index
    %35 = memref.load %arg1[%c16] : memref<33xf32, #tpu.memory_space<smem>>
    %36 = vector.broadcast %35 : f32 to vector<8x128xf32>
    %37 = arith.mulf %18, %36 : vector<8x128xf32>
    %38 = arith.addf %34, %37 : vector<8x128xf32>
    %c20 = arith.constant 20 : index
    %39 = memref.load %arg1[%c20] : memref<33xf32, #tpu.memory_space<smem>>
    %40 = vector.broadcast %39 : f32 to vector<8x128xf32>
    %41 = arith.mulf %24, %40 : vector<8x128xf32>
    %42 = arith.addf %38, %41 : vector<8x128xf32>
    %c9 = arith.constant 9 : index
    %43 = memref.load %arg1[%c9] : memref<33xf32, #tpu.memory_space<smem>>
    %44 = vector.broadcast %43 : f32 to vector<8x128xf32>
    %45 = arith.mulf %6, %44 : vector<8x128xf32>
    %c25 = arith.constant 25 : index
    %46 = memref.load %arg1[%c25] : memref<33xf32, #tpu.memory_space<smem>>
    %47 = vector.broadcast %46 : f32 to vector<8x128xf32>
    %48 = arith.addf %45, %47 : vector<8x128xf32>
    %c13 = arith.constant 13 : index
    %49 = memref.load %arg1[%c13] : memref<33xf32, #tpu.memory_space<smem>>
    %50 = vector.broadcast %49 : f32 to vector<8x128xf32>
    %51 = arith.mulf %12, %50 : vector<8x128xf32>
    %52 = arith.addf %48, %51 : vector<8x128xf32>
    %c17 = arith.constant 17 : index
    %53 = memref.load %arg1[%c17] : memref<33xf32, #tpu.memory_space<smem>>
    %54 = vector.broadcast %53 : f32 to vector<8x128xf32>
    %55 = arith.mulf %18, %54 : vector<8x128xf32>
    %56 = arith.addf %52, %55 : vector<8x128xf32>
    %c21 = arith.constant 21 : index
    %57 = memref.load %arg1[%c21] : memref<33xf32, #tpu.memory_space<smem>>
    %58 = vector.broadcast %57 : f32 to vector<8x128xf32>
    %59 = arith.mulf %24, %58 : vector<8x128xf32>
    %60 = arith.addf %56, %59 : vector<8x128xf32>
    %c10 = arith.constant 10 : index
    %61 = memref.load %arg1[%c10] : memref<33xf32, #tpu.memory_space<smem>>
    %62 = vector.broadcast %61 : f32 to vector<8x128xf32>
    %63 = arith.mulf %6, %62 : vector<8x128xf32>
    %c26 = arith.constant 26 : index
    %64 = memref.load %arg1[%c26] : memref<33xf32, #tpu.memory_space<smem>>
    %65 = vector.broadcast %64 : f32 to vector<8x128xf32>
    %66 = arith.addf %63, %65 : vector<8x128xf32>
    %c14 = arith.constant 14 : index
    %67 = memref.load %arg1[%c14] : memref<33xf32, #tpu.memory_space<smem>>
    %68 = vector.broadcast %67 : f32 to vector<8x128xf32>
    %69 = arith.mulf %12, %68 : vector<8x128xf32>
    %70 = arith.addf %66, %69 : vector<8x128xf32>
    %c18 = arith.constant 18 : index
    %71 = memref.load %arg1[%c18] : memref<33xf32, #tpu.memory_space<smem>>
    %72 = vector.broadcast %71 : f32 to vector<8x128xf32>
    %73 = arith.mulf %18, %72 : vector<8x128xf32>
    %74 = arith.addf %70, %73 : vector<8x128xf32>
    %c22 = arith.constant 22 : index
    %75 = memref.load %arg1[%c22] : memref<33xf32, #tpu.memory_space<smem>>
    %76 = vector.broadcast %75 : f32 to vector<8x128xf32>
    %77 = arith.mulf %24, %76 : vector<8x128xf32>
    %78 = arith.addf %74, %77 : vector<8x128xf32>
    %c11 = arith.constant 11 : index
    %79 = memref.load %arg1[%c11] : memref<33xf32, #tpu.memory_space<smem>>
    %80 = vector.broadcast %79 : f32 to vector<8x128xf32>
    %81 = arith.mulf %6, %80 : vector<8x128xf32>
    %c27 = arith.constant 27 : index
    %82 = memref.load %arg1[%c27] : memref<33xf32, #tpu.memory_space<smem>>
    %83 = vector.broadcast %82 : f32 to vector<8x128xf32>
    %84 = arith.addf %81, %83 : vector<8x128xf32>
    %c15 = arith.constant 15 : index
    %85 = memref.load %arg1[%c15] : memref<33xf32, #tpu.memory_space<smem>>
    %86 = vector.broadcast %85 : f32 to vector<8x128xf32>
    %87 = arith.mulf %12, %86 : vector<8x128xf32>
    %88 = arith.addf %84, %87 : vector<8x128xf32>
    %c19 = arith.constant 19 : index
    %89 = memref.load %arg1[%c19] : memref<33xf32, #tpu.memory_space<smem>>
    %90 = vector.broadcast %89 : f32 to vector<8x128xf32>
    %91 = arith.mulf %18, %90 : vector<8x128xf32>
    %92 = arith.addf %88, %91 : vector<8x128xf32>
    %c23 = arith.constant 23 : index
    %93 = memref.load %arg1[%c23] : memref<33xf32, #tpu.memory_space<smem>>
    %94 = vector.broadcast %93 : f32 to vector<8x128xf32>
    %95 = arith.mulf %24, %94 : vector<8x128xf32>
    %96 = arith.addf %92, %95 : vector<8x128xf32>
    %c28 = arith.constant 28 : index
    %97 = memref.load %arg1[%c28] : memref<33xf32, #tpu.memory_space<smem>>
    %98 = vector.broadcast %97 : f32 to vector<8x128xf32>
    %99 = arith.mulf %42, %98 : vector<8x128xf32>
    %c32 = arith.constant 32 : index
    %100 = memref.load %arg1[%c32] : memref<33xf32, #tpu.memory_space<smem>>
    %101 = vector.broadcast %100 : f32 to vector<8x128xf32>
    %102 = arith.addf %99, %101 : vector<8x128xf32>
    %c29 = arith.constant 29 : index
    %103 = memref.load %arg1[%c29] : memref<33xf32, #tpu.memory_space<smem>>
    %104 = vector.broadcast %103 : f32 to vector<8x128xf32>
    %105 = arith.mulf %60, %104 : vector<8x128xf32>
    %106 = arith.addf %102, %105 : vector<8x128xf32>
    %c30 = arith.constant 30 : index
    %107 = memref.load %arg1[%c30] : memref<33xf32, #tpu.memory_space<smem>>
    %108 = vector.broadcast %107 : f32 to vector<8x128xf32>
    %109 = arith.mulf %78, %108 : vector<8x128xf32>
    %110 = arith.addf %106, %109 : vector<8x128xf32>
    %c31 = arith.constant 31 : index
    %111 = memref.load %arg1[%c31] : memref<33xf32, #tpu.memory_space<smem>>
    %112 = vector.broadcast %111 : f32 to vector<8x128xf32>
    %113 = arith.mulf %96, %112 : vector<8x128xf32>
    %114 = arith.addf %110, %113 : vector<8x128xf32>
    %cst = arith.constant 0.000000e+00 : f32
    %115 = vector.broadcast %cst : f32 to vector<8x128xf32>
    %116 = arith.maximumf %114, %115 : vector<8x128xf32>
    %c0_2 = arith.constant 0 : index
    %c0_3 = arith.constant 0 : index
    %117 = vector.load %arg3[%c0_2, %c0_3] : memref<8x128xf32, #tpu.memory_space<vmem>>, vector<8x128xf32>
    tpu.vector_store %arg3[%c0_2, %c0_3], %116 {strides = array<i32>} : memref<8x128xf32, #tpu.memory_space<vmem>>, vector<8x128xf32>,
    return
  }
  func.func @transform_0(%arg0: i32) -> i32 {
    %c0_i32 = arith.constant 0 : i32
    %c0_i32_0 = arith.constant 0 : i32
    return %c0_i32 : i32
  }
  func.func @transform_1(%arg0: i32) -> (i32, i32) {
    %c0_i32 = arith.constant 0 : i32
    %c0_i32_0 = arith.constant 0 : i32
    return %arg0, %c0_i32 : i32, i32
  }
  func.func @transform_2(%arg0: i32) -> (i32, i32) {
    %c0_i32 = arith.constant 0 : i32
    %c0_i32_0 = arith.constant 0 : i32
    return %arg0, %c0_i32 : i32, i32
  }
}

</mosaic_0001>

<bundles_post_ra>
// kernel: tpu_custom_call.1
= control target key start
LH: loop header
LB: loop body
LE: loop exit
PB: predicated region body
PF: predicated region fallthrough
CT: control target
= control target key end

     0   :  { %7 = vsyncpa [#allocation5], 0  ;;  %s329_s0 = inlined_call_operand.hbm [shape: f32[33], index: 0, kind: input, shape index: {}]   ;;  %s330_s1 = inlined_call_operand.hbm [shape: f32[8,128], index: 1, kind: input, shape index: {}]   ;;  %s331_s2 = inlined_call_operand.hbm [shape: f32[8,128], index: 2, kind: output, shape index: {}]  }
   0x1   :  { %8 = vsyncpa [#allocation3], 0 }
   0x2   :  { %9 = vsyncpa [#allocation4], 0  ;;  %s15_s11 = sshll.u32 %s329_s0, 4  ;;  %s24_s14 = sshll.u32 %s330_s1, 4  ;;  %s16_s11 = int_to_ptr.hbm [resolvable:$true] %s15_s11  ;;  %s25_s14 = int_to_ptr.hbm [resolvable:$true] %s24_s14 }
   0x3   :  { %s275_s15 = smov [#allocation2]   ;;  %s276_s16 = smov [#allocation6]  }
   0x4   :  { %18 = dma.hbm_to_smem %s16_s11, 16, %s275_s15, [#allocation5]  }
   0x5   :  { %s26_s17 = sshll.u32 %s276_s16, 4  ;;  %s27_s17 = int_to_ptr.vmem [resolvable:$true] %s26_s17 }
   0x6   :  { %29 = dma.hbm_to_vmem [thread:$0]  %s25_s14, 128, %s27_s17, [#allocation3]  }
   0x7   :  { %269 = dma.done.wait [#allocation5], 16  }
   0x8   :  { %270 = vsyncadd [#allocation5], 4294967280 }
   0x9   :  { %271 = dma.done.wait [#allocation3], 128  }
   0xa   :  { %272 = vsyncadd [#allocation3], 4294967168 }
   0xb   :  { %38 = sfence }
   0xc   :  { %s40_s18 = sld [smem:[#allocation2]]  ;;  %v39_v0 = vld [vmem:[#allocation6] sm:$0xff] }
   0xd   :  { %s174_s19 = sld [smem:[#allocation2 + $0x4]] }
   0xe   :  { %s175_s0 = sld [smem:[#allocation2 + $0x1]] }
   0xf   :  { %s176_s20 = sld [smem:[#allocation2 + $0x5]] }
  0x10   :  { %s177_s21 = sld [smem:[#allocation2 + $0x2]] }
  0x11   :  { %s178_s22 = sld [smem:[#allocation2 + $0x6]] }
  0x12   :  { %v41_v1 = vstv %s40_s18  ;;  %s179_s1 = sld [smem:[#allocation2 + $0x3]] }
  0x13   :  { %v42_v2 = vmul.f32 %v41_v1, %v39_v0  ;;  %s299_s23 = sld [smem:[#allocation2 + $0x7]]  ;;  %v44_v3 = vstv %s174_s19 }
  0x14   :  { %v47_v4 = vstv %s175_s0  ;;  %s181_s24 = sld [smem:[#allocation2 + $0x8]] }
  0x15   :  { %s182_s25 = sld [smem:[#allocation2 + $0x18]]  ;;  %v301_v5 = vadd.f32 %v44_v3, %v42_v2  ;;  %v48_v6 = vmul.f32 %v47_v4, %v39_v0  ;;  %v50_v8 = vstv %s176_s20  ;;  %s277_s20 = smov [#allocation7]  }
  0x16   :  { %s183_s26 = sld [smem:[#allocation2 + $0xc]]  ;;  %v53_v7 = vstv %s177_s21  ;;  %s161_s21 = sshll.u32 %s277_s20, 4  ;;  %s162_s21 = int_to_ptr.vmem [resolvable:$true] %s161_s21 }
  0x17   :  { %s303_s27 = sld [smem:[#allocation2 + $0x10]]  ;;  %v54_v9 = vmul.f32 %v53_v7, %v39_v0  ;;  %v307_v11 = vadd.f32 %v50_v8, %v48_v6  ;;  %v56_v12 = vstv %s178_s22 }
  0x18   :  { %s305_s28 = sld [smem:[#allocation2 + $0x14]]  ;;  %v59_v13 = vstv %s179_s1 }
  0x19   :  { %s186_s29 = sld [smem:[#allocation2 + $0x9]]  ;;  %v57_v17 = vadd.f32 %v56_v12, %v54_v9  ;;  %v60_v18 = vmul.f32 %v59_v13, %v39_v0  ;;  %v62_v19 = vstv %s299_s23  ;;  %s163_s23 = sshll.u32 %s331_s2, 4  ;;  %s164_s23 = int_to_ptr.hbm [resolvable:$true] %s163_s23 }
  0x1a   :  { %v65_v10 = vstv %s181_s24  ;;  %s187_s30 = sld [smem:[#allocation2 + $0x19]] }
  0x1b   :  { %v66_v14 = vmul.f32 %v65_v10, %v301_v5  ;;  %s188_s3 = sld [smem:[#allocation2 + $0xd]]  ;;  %v68_v15 = vstv %s182_s25  ;;  %v63_v27 = vadd.f32 %v62_v19, %v60_v18 }
  0x1c   :  { %v71_v16 = vstv %s183_s26  ;;  %s189_s4 = sld [smem:[#allocation2 + $0x11]] }
  0x1d   :  { %s310_s5 = sld [smem:[#allocation2 + $0x15]]  ;;  %v69_v20 = vadd.f32 %v68_v15, %v66_v14  ;;  %v72_v21 = vmul.f32 %v71_v16, %v307_v11  ;;  %v75_v23 = vstv %s303_s27 }
  0x1e   :  { %s191_s6 = sld [smem:[#allocation2 + $0xa]]  ;;  %v76_v32 = vmul.f32 %v75_v23, %v57_v17  ;;  %v79_v33 = vstv %s305_s28 }
  0x1f   :  { %v83_v22 = vstv %s186_s29  ;;  %s192_s7 = sld [smem:[#allocation2 + $0x1a]]  ;;  %v73_v31 = vadd.f32 %v72_v21, %v69_v20  ;;  %v80_v39 = vmul.f32 %v79_v33, %v63_v27 }
  0x20   :  { %v84_v24 = vmul.f32 %v83_v22, %v301_v5  ;;  %v86_v25 = vstv %s187_s30  ;;  %s193_s8 = sld [smem:[#allocation2 + $0xe]] }
  0x21   :  { %v89_v26 = vstv %s188_s3  ;;  %s194_s9 = sld [smem:[#allocation2 + $0x12]]  ;;  %v77_v42 = vadd.f32 %v76_v32, %v73_v31 }
  0x22   :  { %v87_v28 = vadd.f32 %v86_v25, %v84_v24  ;;  %v90_v29 = vmul.f32 %v89_v26, %v307_v11  ;;  %v93_v30 = vstv %s189_s4  ;;  %s195_s10 = sld [smem:[#allocation2 + $0x16]] }
  0x23   :  { %s196_s11 = sld [smem:[#allocation2 + $0xb]]  ;;  %v94_v36 = vmul.f32 %v93_v30, %v57_v17  ;;  %v97_v40 = vstv %s310_s5  ;;  %v81_v55 = vadd.f32 %v80_v39, %v77_v42 }
  0x24   :  { %v101_v34 = vstv %s191_s6  ;;  %s318_s12 = sld [smem:[#allocation2 + $0x1b]]  ;;  %v91_v35 = vadd.f32 %v90_v29, %v87_v28  ;;  %v98_v49 = vmul.f32 %v97_v40, %v63_v27 }
  0x25   :  { %v102_v37 = vmul.f32 %v101_v34, %v301_v5  ;;  %v104_v38 = vstv %s192_s7  ;;  %s198_s13 = sld [smem:[#allocation2 + $0xf]] }
  0x26   :  { %v107_v41 = vstv %s193_s8  ;;  %s199_s14 = sld [smem:[#allocation2 + $0x13]]  ;;  %v95_v48 = vadd.f32 %v94_v36, %v91_v35 }
  0x27   :  { %v105_v43 = vadd.f32 %v104_v38, %v102_v37  ;;  %v108_v44 = vmul.f32 %v107_v41, %v307_v11  ;;  %v111_v45 = vstv %s194_s9  ;;  %s200_s15 = sld [smem:[#allocation2 + $0x17]] }
  0x28   :  { %v112_v46 = vmul.f32 %v111_v45, %v57_v17  ;;  %v115_v47 = vstv %s195_s10  ;;  %s201_s16 = sld [smem:[#allocation2 + $0x1c]]  ;;  %v99_v61 = vadd.f32 %v98_v49, %v95_v48 }
  0x29   :  { %v109_v50 = vadd.f32 %v108_v44, %v105_v43  ;;  %v119_v51 = vstv %s196_s11  ;;  %s202_s17 = sld [smem:[#allocation2 + $0x20]]  ;;  %v116_v52 = vmul.f32 %v115_v47, %v63_v27 }
  0x2a   :  { %v120_v53 = vmul.f32 %v119_v51, %v301_v5  ;;  %v122_v54 = vstv %s318_s12  ;;  %s203_s18 = sld [smem:[#allocation2 + $0x1d]] }
  0x2b   :  { %v113_v56 = vadd.f32 %v112_v46, %v109_v50  ;;  %v125_v57 = vstv %s198_s13  ;;  %s204_s19 = sld [smem:[#allocation2 + $0x1e]] }
  0x2c   :  { %v123_v58 = vadd.f32 %v122_v54, %v120_v53  ;;  %v126_v59 = vmul.f32 %v125_v57, %v307_v11  ;;  %v129_v60 = vstv %s199_s14  ;;  %s205_s0 = sld [smem:[#allocation2 + $0x1f]] }
  0x2d   :  { %v130_v62 = vmul.f32 %v129_v60, %v57_v17  ;;  %v133_v63 = vstv %s200_s15  ;;  %v117_v0 = vadd.f32 %v116_v52, %v113_v56 }
  0x2e   :  { %v127_v1 = vadd.f32 %v126_v59, %v123_v58  ;;  %v134_v2 = vmul.f32 %v133_v63, %v63_v27  ;;  %v137_v3 = vstv %s201_s16 }
  0x2f   :  { %v138_v4 = vmul.f32 %v137_v3, %v81_v55  ;;  %v140_v5 = vstv %s202_s17 }
  0x30   :  { %v131_v6 = vadd.f32 %v130_v62, %v127_v1  ;;  %v143_v7 = vstv %s203_s18 }
  0x31   :  { %v141_v8 = vadd.f32 %v140_v5, %v138_v4  ;;  %v144_v9 = vmul.f32 %v143_v7, %v99_v61  ;;  %v147_v10 = vstv %s204_s19 }
  0x32   :  { %v135_v12 = vadd.f32 %v134_v2, %v131_v6  ;;  %v148_v13 = vmul.f32 %v147_v10, %v117_v0  ;;  %v151_v14 = vstv %s205_s0 }
  0x33   :  { %v145_v11 = vadd.f32 %v144_v9, %v141_v8 }
  0x34   :  { %v152_v15 = vmul.f32 %v151_v14, %v135_v12 }
  0x35   :  { %v149_v16 = vadd.f32 %v148_v13, %v145_v11 }
  0x37   :  { %v153_v17 = vadd.f32 %v152_v15, %v149_v16 }
  0x39   :  { %v154_v18 = vmax.f32 %v153_v17, 0.0 }
  0x3b   :  { %155 = vst [vmem:[#allocation7] sm:$0xff] %v154_v18 }
  0x3c   :  { %166 = dma.vmem_to_hbm [thread:$0]  %s162_s21, 128, %s164_s23, [#allocation4]  }
  0x3d   :  { %273 = dma.done.wait [#allocation4], 128  }
  0x3e   :  { %274 = vsyncadd [#allocation4], 4294967168 }
  0x3f   :  { %171 = vsyncpa [#allocation3], 1 }
  0x40   :  { %172 = vsyncpa [#allocation4], 1 }
  0x41   :  { %173 = vsyncpa [#allocation5], 1 }

</bundles_post_ra>
